<compile_context>
chip_gen: v7x
topology: tpu7x:2x2x1
jax: 0.10.0
libtpu: 0.0.40
codegen_flags: <defaults>
</compile_context>

<pallas_src>
import jax
import jax.numpy as jnp
from jax.experimental import pallas as pl
from jax.experimental.pallas import tpu as pltpu


def _silu(x):
    return x * jax.nn.sigmoid(x)


def simple_linear_kernel(xs_ref, w_big_ref, b_big_ref, w_f_ref, b_f_ref, out_ref):
    # xs_ref    : (3B, 2D)  rows = [ [x1|x3] ; [t1|t3] ; [t2|0] ]
    # w_big_ref : (2D, 3C)  C = round_up(2H, 128); column blocks are
    #             [ blkdiag(w_in,w_in) | blkdiag(w_t,w_t) | [w_t2;0] ] zero-padded
    # b_big_ref : (1, 3C)   [ b_in|b_in | b_t|b_t | b_t2 ] zero-padded per block
    # w_f_ref   : (2H, O)
    # b_f_ref   : (1, O)
    B = out_ref.shape[0]
    twoH = w_f_ref.shape[0]
    C = w_big_ref.shape[1] // 3

    # Single first-stage MXU pass. Every logical block starts at a 128-lane
    # (vreg) boundary and on a sublane-tile row offset, so the slices below
    # need no cross-lane moves before the VPU/EUP work.
    y = (jnp.dot(xs_ref[...], w_big_ref[...], preferred_element_type=jnp.float32)
         + b_big_ref[...])

    xpart = y[0 * B:1 * B, 0 * C:0 * C + twoH]    # [x1@w_in+b | x3@w_in+b]   (B, 2H)
    tpart = y[1 * B:2 * B, 1 * C:1 * C + twoH]    # [t1@w_t +b | t3@w_t +b]   (B, 2H)
    t2part = y[2 * B:3 * B, 2 * C:2 * C + twoH]   # t2@w_t2 + b_t2            (B, 2H)

    # input_layer SiLU + FiLM-style modulation.  res1 lives in lanes 0:H and
    # res3 in lanes H:2H of the same rows, so `combined` is already
    # torch.cat((res1, res3), dim=1) with no in-kernel concat.
    a = _silu(xpart)
    combined = a * (1.0 + tpart) + tpart
    res2 = combined * (1.0 + t2part) + t2part

    # Final projection: one MXU pass (B, 2H) @ (2H, O).
    out = (jnp.dot(res2, w_f_ref[...], preferred_element_type=jnp.float32)
           + b_f_ref[...])
    out_ref[...] = out.astype(out_ref.dtype)


def _round_up(n, m):
    return ((n + m - 1) // m) * m


def _blockdiag2(w):
    d, h = w.shape
    z = jnp.zeros((d, h), w.dtype)
    top = jnp.concatenate([w, z], axis=1)
    bot = jnp.concatenate([z, w], axis=1)
    return jnp.concatenate([top, bot], axis=0)               # (2d, 2h)


def _pad_cols(m, width):
    pad = width - m.shape[1]
    return m if pad == 0 else jnp.pad(m, ((0, 0), (0, pad)))


def simple_linear_forward(x1, x3, t1, t2, t3, params):
    B, D = x1.shape
    H = params["w_in"].shape[1]
    O = params["w_f"].shape[1]
    twoH = 2 * H
    C = _round_up(twoH, 128)      # vreg-aligned column-block stride

    # --- wrapper-side layout plumbing (pure concat / zero-pad, no math) -----
    zeros_bd = jnp.zeros((B, D), x1.dtype)
    xs = jnp.concatenate([
        jnp.concatenate([x1, x3], axis=1),
        jnp.concatenate([t1, t3], axis=1),
        jnp.concatenate([t2, zeros_bd], axis=1),
    ], axis=0)                                               # (3B, 2D)

    w_t2_blk = jnp.concatenate(
        [params["w_t2"], jnp.zeros((D, twoH), params["w_t2"].dtype)], axis=0)
    w_big = jnp.concatenate([
        _pad_cols(_blockdiag2(params["w_in"]), C),
        _pad_cols(_blockdiag2(params["w_t"]), C),
        _pad_cols(w_t2_blk, C),
    ], axis=1)                                               # (2D, 3C)

    b_big = jnp.concatenate([
        _pad_cols(jnp.concatenate([params["b_in"], params["b_in"]], axis=1), C),
        _pad_cols(jnp.concatenate([params["b_t"], params["b_t"]], axis=1), C),
        _pad_cols(params["b_t2"], C),
    ], axis=1)                                               # (1, 3C)

    vmem = pl.BlockSpec(memory_space=pltpu.MemorySpace.VMEM)
    args = (xs, w_big, b_big, params["w_f"], params["b_f"])
    return pl.pallas_call(
        simple_linear_kernel,
        out_shape=jax.ShapeDtypeStruct((B, O), jnp.float32),
        in_specs=[vmem] * len(args),
        out_specs=vmem,
    )(*args)


def init_params(key, input_size, hidden_size, output_size):
    ks = jax.random.split(key, 8)

    def lin(kw, kb, fan_in, fan_out):
        bound = 1.0 / jnp.sqrt(fan_in)
        w = jax.random.uniform(kw, (fan_in, fan_out), jnp.float32, -bound, bound)
        b = jax.random.uniform(kb, (1, fan_out), jnp.float32, -bound, bound)
        return w, b

    w_in, b_in = lin(ks[0], ks[1], input_size, hidden_size)
    w_t, b_t = lin(ks[2], ks[3], input_size, hidden_size)
    w_t2, b_t2 = lin(ks[4], ks[5], input_size, hidden_size * 2)
    w_f, b_f = lin(ks[6], ks[7], hidden_size * 2, output_size)
    return dict(w_in=w_in, b_in=b_in, w_t=w_t, b_t=b_t,
                w_t2=w_t2, b_t2=b_t2, w_f=w_f, b_f=b_f)


def reference_forward(x1, x3, t1, t2, t3, p):
    x1 = jax.nn.silu(x1 @ p["w_in"] + p["b_in"])
    x3 = jax.nn.silu(x3 @ p["w_in"] + p["b_in"])
    t1 = t1 @ p["w_t"] + p["b_t"]
    t3 = t3 @ p["w_t"] + p["b_t"]
    t2 = t2 @ p["w_t2"] + p["b_t2"]
    res1 = x1 * (1 + t1) + t1
    res3 = x3 * (1 + t3) + t3
    combined = jnp.concatenate([res1, res3], axis=1)
    res2 = combined * (1 + t2) + t2
    return res2 @ p["w_f"] + p["b_f"]


if __name__ == "__main__":
    input_size, hidden_size, output_size = 16, 32, 8
    batch = 8

    key = jax.random.PRNGKey(0)
    kp, kx1, kx3, kt1, kt2, kt3 = jax.random.split(key, 6)
    params = init_params(kp, input_size, hidden_size, output_size)

    x1 = jax.random.normal(kx1, (batch, input_size), jnp.float32)
    x3 = jax.random.normal(kx3, (batch, input_size), jnp.float32)
    t1 = jax.random.normal(kt1, (batch, input_size), jnp.float32)
    t2 = jax.random.normal(kt2, (batch, input_size), jnp.float32)
    t3 = jax.random.normal(kt3, (batch, input_size), jnp.float32)

    out = simple_linear_forward(x1, x3, t1, t2, t3, params)
    out = jax.block_until_ready(out)

    ref = reference_forward(x1, x3, t1, t2, t3, params)
    assert out.shape == (batch, output_size)
    assert jnp.allclose(out, ref, atol=1e-5, rtol=1e-5), "mismatch vs reference"
    print("KERNEL_OK")
</pallas_src>

<mosaic_0001>
module attributes {stable_mosaic.version = 11 : i64} {
  func.func @simple_linear_kernel(%arg0: memref<24x32xf32, #tpu.memory_space<vmem>>, %arg1: memref<32x384xf32, #tpu.memory_space<vmem>>, %arg2: memref<1x384xf32, #tpu.memory_space<vmem>>, %arg3: memref<64x8xf32, #tpu.memory_space<vmem>>, %arg4: memref<1x8xf32, #tpu.memory_space<vmem>>, %arg5: memref<8x8xf32, #tpu.memory_space<vmem>>) attributes {dimension_semantics = [], scalar_prefetch = 0 : i64, scratch_operands = 0 : i64, tpu.core_type = #tpu.core_type<tc>} {
    %c0 = arith.constant 0 : index
    %c0_0 = arith.constant 0 : index
    %0 = vector.load %arg0[%c0, %c0_0] : memref<24x32xf32, #tpu.memory_space<vmem>>, vector<24x32xf32>
    %c0_1 = arith.constant 0 : index
    %c0_2 = arith.constant 0 : index
    %1 = vector.load %arg1[%c0_1, %c0_2] : memref<32x384xf32, #tpu.memory_space<vmem>>, vector<32x384xf32>
    %cst = arith.constant dense<0.000000e+00> : vector<24x384xf32>
    %2 = tpu.matmul %0, %1, %cst {dimension_numbers = #tpu.dot_dimension_numbers<[1], [0], [0], [1], [0, 0, 1, 1], [], []>} : vector<24x32xf32>, vector<32x384xf32>, vector<24x384xf32> -> vector<24x384xf32>
    %c0_3 = arith.constant 0 : index
    %c0_4 = arith.constant 0 : index
    %3 = vector.load %arg2[%c0_3, %c0_4] : memref<1x384xf32, #tpu.memory_space<vmem>>, vector<1x384xf32>
    %4 = vector.broadcast %3 : vector<1x384xf32> to vector<24x384xf32>
    %5 = arith.addf %2, %4 : vector<24x384xf32>
    %6 = vector.extract_strided_slice %5 {offsets = [0, 0], sizes = [8, 64], strides = [1, 1]} : vector<24x384xf32> to vector<8x64xf32>
    %7 = vector.extract_strided_slice %5 {offsets = [8, 128], sizes = [8, 64], strides = [1, 1]} : vector<24x384xf32> to vector<8x64xf32>
    %8 = vector.extract_strided_slice %5 {offsets = [16, 256], sizes = [8, 64], strides = [1, 1]} : vector<24x384xf32> to vector<8x64xf32>
    %9 = arith.negf %6 : vector<8x64xf32>
    %10 = math.exp %9 : vector<8x64xf32>
    %cst_5 = arith.constant 1.000000e+00 : f32
    %11 = vector.broadcast %cst_5 : f32 to vector<8x64xf32>
    %12 = arith.addf %11, %10 : vector<8x64xf32>
    %13 = arith.divf %11, %12 : vector<8x64xf32>
    %14 = arith.mulf %6, %13 : vector<8x64xf32>
    %cst_6 = arith.constant 1.000000e+00 : f32
    %15 = vector.broadcast %cst_6 : f32 to vector<8x64xf32>
    %16 = arith.addf %15, %7 : vector<8x64xf32>
    %17 = arith.mulf %14, %16 : vector<8x64xf32>
    %18 = arith.addf %17, %7 : vector<8x64xf32>
    %cst_7 = arith.constant 1.000000e+00 : f32
    %19 = vector.broadcast %cst_7 : f32 to vector<8x64xf32>
    %20 = arith.addf %19, %8 : vector<8x64xf32>
    %21 = arith.mulf %18, %20 : vector<8x64xf32>
    %22 = arith.addf %21, %8 : vector<8x64xf32>
    %c0_8 = arith.constant 0 : index
    %c0_9 = arith.constant 0 : index
    %23 = vector.load %arg3[%c0_8, %c0_9] : memref<64x8xf32, #tpu.memory_space<vmem>>, vector<64x8xf32>
    %cst_10 = arith.constant dense<0.000000e+00> : vector<8x8xf32>
    %24 = tpu.matmul %22, %23, %cst_10 {dimension_numbers = #tpu.dot_dimension_numbers<[1], [0], [0], [1], [0, 0, 1, 1], [], []>} : vector<8x64xf32>, vector<64x8xf32>, vector<8x8xf32> -> vector<8x8xf32>
    %c0_11 = arith.constant 0 : index
    %c0_12 = arith.constant 0 : index
    %25 = vector.load %arg4[%c0_11, %c0_12] : memref<1x8xf32, #tpu.memory_space<vmem>>, vector<1x8xf32>
    %26 = vector.broadcast %25 : vector<1x8xf32> to vector<8x8xf32>
    %27 = arith.addf %24, %26 : vector<8x8xf32>
    %c0_13 = arith.constant 0 : index
    %c0_14 = arith.constant 0 : index
    %28 = vector.load %arg5[%c0_13, %c0_14] : memref<8x8xf32, #tpu.memory_space<vmem>>, vector<8x8xf32>
    tpu.vector_store %arg5[%c0_13, %c0_14], %27 {strides = array<i32>} : memref<8x8xf32, #tpu.memory_space<vmem>>, vector<8x8xf32>,
    return
  }
}

</mosaic_0001>

<bundles_post_ra>
// kernel: tpu_custom_call.1
= control target key start
LH: loop header
LB: loop body
LE: loop exit
PB: predicated region body
PF: predicated region fallthrough
CT: control target
= control target key end

     0   :  { %10 = vsyncpa [#allocation3], 0  ;;  %s603_s0 = inlined_call_operand.vmem [shape: f32[24,32], index: 0, kind: input, shape index: {}]   ;;  %s604_s1 = inlined_call_operand.hbm [shape: f32[32,384], index: 1, kind: input, shape index: {}]   ;;  %s605_s2 = inlined_call_operand.vmem [shape: f32[1,384], index: 2, kind: input, shape index: {}]   ;;  %s606_s3 = inlined_call_operand.vmem [shape: f32[64,8], index: 3, kind: input, shape index: {}]   ;;  %s607_s4 = inlined_call_operand.vmem [shape: f32[1,8], index: 4, kind: input, shape index: {}]   ;;  %s608_s5 = inlined_call_operand.hbm [shape: f32[8,8], index: 5, kind: output, shape index: {}]  }
   0x1   :  { %11 = vsyncpa [#allocation4], 0  ;;  %s499_s18 = smov [#allocation2]   ;;  %s451_s22 = scalar_lea.hbm %s604_s1, 1536 }
   0x2   :  { %s19_s19 = sshll.u32 %s499_s18, 4  ;;  %p452_p0 = scmp.ne.s32.totalorder %s604_s1, %s451_s22  ;;  %s20_s19 = int_to_ptr.vmem [resolvable:$true] %s19_s19 }
   0x3   :  { %p455_p1 = scmp.lt.u32.totalorder %s451_s22, %s604_s1 }
   0x5   :  { %p457_p2 = pnand %p455_p1, %p452_p0 }
   0x7   :  { %460 = shalt.err (!%p457_p2)
}
   0x8   :  { %s461_s27 = scalar_lea.vmem %s20_s19, 1536  ;;  %p466_p4 = scmp.lt.s32.totalorder %s20_s19, %s20_s19 }
   0x9   :  { %p462_p3 = scmp.ne.s32.totalorder %s20_s19, %s461_s27  ;;  %p467_p5 = scmp.lt.s32.totalorder %s461_s27, %s461_s27 }
   0xb   :  { %p468_p6 = por %p467_p5, %p466_p4 }
   0xd   :  { %p469_p7 = pnand %p468_p6, %p462_p3 }
   0xf   :  { %472 = shalt.err (!%p469_p7)
}
  0x10   :  { %s500_s28 = smov 384   ;;  %s501_s29 = smov 24  }
  0x11   :  { %25 = dma.hbm_to_vmem [thread:$0]  %s604_s1, 1536, %s20_s19, [#allocation3], %s500_s28, %s500_s28, %s501_s29  }
  0x12   :  { %495 = dma.done.wait [#allocation3], 1536  }
  0x13   :  { %496 = vsyncadd [#allocation3], 4294965760  ;;  %v502_v0 = vmov 0.0   ;;  %v503_v1 = vmov 0.0|0.0   ;;  %vm504_vm0 = vmmov 0   ;;  %v39_v2 = vld [vmem:[#allocation2 + $0x8] sm:$0xff]  ;;  %v52_v35 = vlaneseq }
  0x14   :  { %141 = vmatprep.mubr.f32.mxu0 %v502_v0  ;;  %422 = vmatprep.subr.bf16.mxu1 %v503_v1  ;;  %v42_v3 = vld [vmem:[#allocation2 + $0x20] sm:$0xff]  ;;  %v41_v6 = vld [vmem:[#allocation2 + $0x18] sm:$0xff]  ;;  %v48_v8 = vld [vmem:[#allocation2 + $0x50] sm:$0xff]  ;;  %vm67_vm1 = vcmask 261120   ;;  %vm262_vm2 = vcmask 523264   ;;  %s505_s29 = smov [#allocation5]  }
  0x15   :  { %386 = vmatprep.mubr.msk.f32.mxu1 %vm504_vm0, %v502_v0  ;;  %v38_v4 = vld [vmem:[#allocation2] sm:$0xff]  ;;  %v414_v5 = vpack.c.bf16 %v42_v3, %v39_v2  ;;  %v45_v7 = vld [vmem:[#allocation2 + $0x38] sm:$0xff]  ;;  %v44_v11 = vld [vmem:[#allocation2 + $0x30] sm:$0xff]  ;;  %v53_v36 = vshrl.u32 %v52_v35, 7  ;;  %s344_s30 = sshll.u32 %s505_s29, 4  ;;  %vm336_vm3 = vcmask 64512   ;;  %s345_s30 = int_to_ptr.vmem [resolvable:$true] %s344_s30 }
  0x16   :  { %v416_v9 = vpack.c.bf16 %v41_v6, %v38_v4  ;;  %v418_v10 = vpack.c.bf16 %v48_v8, %v45_v7  ;;  %v47_v12 = vld [vmem:[#allocation2 + $0x48] sm:$0xff]  ;;  %v40_v13 = vld [vmem:[#allocation2 + $0x10] sm:$0xff]  ;;  %v46_v15 = vld [vmem:[#allocation2 + $0x40] sm:$0xff]  ;;  %s473_s6 = scalar_lea.vmem %s345_s30, 128  ;;  %p478_p9 = scmp.lt.s32.totalorder %s345_s30, %s345_s30 }
  0x17   :  { %415 = vmatprep.subr.bf16.mxu0 %v414_v5  ;;  %v43_v14 = vld [vmem:[#allocation2 + $0x28] sm:$0xff]  ;;  %v420_v16 = vpack.c.bf16 %v47_v12, %v44_v11  ;;  %v49_v18 = vld [vmem:[#allocation2 + $0x58] sm:$0xff]  ;;  %v35_v20 = vld [vmem:[%s603_s0] sm:$0xff]  ;;  %v54_v37 = vsub.s32 0, %v53_v36  ;;  %v58_v55 = vsub.s32 1, %v53_v36  ;;  %v62_v58 = vsub.s32 2, %v53_v36  ;;  %p474_p8 = scmp.ne.s32.totalorder %s345_s30, %s473_s6  ;;  %p479_p10 = scmp.lt.s32.totalorder %s473_s6, %s473_s6 }
  0x18   :  { %417 = vmatpush1.bf16.msra.mxu0 %v416_v9  ;;  %v423_v17 = vpack.c.bf16 %v43_v14, %v40_v13  ;;  %v426_v19 = vpack.c.bf16 %v49_v18, %v46_v15  ;;  %v36_v21 = vld [vmem:[%s603_s0 + $0x8] sm:$0xff]  ;;  %v37_v22 = vld [vmem:[%s603_s0 + $0x10] sm:$0xff]  ;;  %v247_v23 = vld [vmem:[%s606_s3] sm:$0xff] }
  0x19   :  { %419 = vmatprep.subr.bf16.mxu0 %v418_v10  ;;  %v248_v24 = vld [vmem:[%s606_s3 + $0x8] sm:$0xff]  ;;  %v249_v26 = vld [vmem:[%s606_s3 + $0x10] sm:$0xff]  ;;  %v250_v27 = vld [vmem:[%s606_s3 + $0x18] sm:$0xff]  ;;  %p480_p11 = por %p479_p10, %p478_p9 }
  0x1a   :  { %424 = vmatpush3.bf16.msra.mxu1 %v423_v17  ;;  %v429_v25 = vpack.c.bf16 %v248_v24, %v247_v23  ;;  %v432_v28 = vpack.c.bf16 %v250_v27, %v249_v26  ;;  %v251_v29 = vld [vmem:[%s606_s3 + $0x20] sm:$0xff]  ;;  %v252_v30 = vld [vmem:[%s606_s3 + $0x28] sm:$0xff]  ;;  %v253_v32 = vld [vmem:[%s606_s3 + $0x30] sm:$0xff] }
  0x1b   :  { %425 = vmatprep.subr.bf16.mxu1 %v503_v1  ;;  %v435_v31 = vpack.c.bf16 %v252_v30, %v251_v29  ;;  %v254_v33 = vld [vmem:[%s606_s3 + $0x38] sm:$0xff]  ;;  %v50_v38 = vld [vmem:[%s605_s2] sm:$0x7]  ;;  %p481_p12 = pnand %p480_p11, %p474_p8 }
  0x1c   :  { %421 = vmatpush1.bf16.msra.mxu0 %v420_v16  ;;  %v438_v34 = vpack.c.bf16 %v254_v33, %v253_v32  ;;  %v55_v39 = vrot.slane %v50_v38, %v54_v37  ;;  %v59_v57 = vrot.slane %v50_v38, %v58_v55  ;;  %v63_v60 = vrot.slane %v50_v38, %v62_v58  ;;  %v360_v6 = vld [vmem:[%s607_s4] ss:$0 sm:$0xff] }
  0x1d   :  { %428 = vmatprep.subr.bf16.mxu0 %v503_v1 }
  0x1e   :  { %427 = vmatpush3.bf16.msra.mxu1 %v426_v19 }
  0x1f   :  { %353 = vmatmul.mubr.msk.f32.vlgmr.msra.gmra.mrb[0].mxu0 %vm67_vm1, %v35_v20 }
  0x20   :  { %146 = vmatprep.mubr.f32.mxu0 %v502_v0  ;;  %430 = vmatpush3.bf16.msra.mxu0 %v429_v25 }
  0x21   :  { %387 = vmatmul.mubr.msk.f32.vlgmr.msra.gmra.mrb[0].mxu1 %vm67_vm1, %v35_v20  ;;  %431 = vmatprep.subr.bf16.mxu0 %v503_v1 }
  0x22   :  { %389 = vmatprep.mubr.msk.f32.mxu1 %vm504_vm0, %v502_v0 }
  0x23   :  { %354 = vmatmul.mubr.msk.f32.gmra.mrb[2].mxu0 %vm67_vm1, %v36_v21 }
  0x24   :  { %151 = vmatprep.mubr.f32.mxu0 %v502_v0  ;;  %433 = vmatpush3.bf16.msra.mxu0 %v432_v28 }
  0x25   :  { %390 = vmatmul.mubr.msk.f32.gmra.mrb[2].mxu1 %vm67_vm1, %v36_v21  ;;  %434 = vmatprep.subr.bf16.mxu0 %v503_v1 }
  0x26   :  { %392 = vmatprep.mubr.msk.f32.mxu1 %vm504_vm0, %v502_v0 }
  0x27   :  { %355 = vmatmul.mubr.msk.f32.gmra.mrb[4].mxu0 %vm67_vm1, %v37_v22 }
  0x28   :  { %411 = vmatprep.mubr.msk.f32.mxu0 %vm504_vm0, %v502_v0  ;;  %436 = vmatpush3.bf16.msra.mxu0 %v435_v31 }
  0x29   :  { %393 = vmatmul.mubr.msk.f32.gmra.mrb[4].mxu1 %vm67_vm1, %v37_v22  ;;  %437 = vmatprep.subr.bf16.mxu0 %v503_v1 }
  0x2c   :  { %439 = vmatpush3.bf16.msra.mxu0 %v438_v34 }
  0xf2   :  { %v143_v40 = vpop.f32.mrb[0].mxu0 }
  0xf3   :  { %v144_v41 = vadd.f32 %v143_v40, %v55_v39  ;;  %v145_v42 = vpop.f32.mrb[1].mxu0 }
  0xf4   :  { %v222_v43 = vpop.f32.mrb[0].mxu1 }
  0xf5   :  { %v359_v44 = vmul.f32 -1.442695, %v144_v41  ;;  %v388_v45 = vpop.f32.mrb[1].mxu1 }
  0xf6   :  { %v148_v46 = vpop.f32.mrb[2].mxu0 }
  0xf7   :  { %447 = vpow2.f32 %v359_v44  ;;  %v149_v47 = vpop.f32.mrb[3].mxu0 }
  0xf8   :  { %v226_v48 = vpop.f32.mrb[2].mxu1  ;;  %v150_v59 = vadd.f32 %v149_v47, %v59_v57 }
  0xf9   :  { %v391_v49 = vpop.f32.mrb[3].mxu1 }
  0xfa   :  { %v153_v50 = vpop.f32.mrb[4].mxu0  ;;  %v241_v61 = vadd.f32 1.0, %v150_v59 }
  0xfb   :  { %v154_v51 = vpop.f32.mrb[5].mxu0 }
  0xfc   :  { %v230_v52 = vpop.f32.mrb[4].mxu1 }
  0xfd   :  { %v394_v53 = vpop.f32.mrb[5].mxu1  ;;  %v231_v62 = vadd.f32 %v230_v52, %v63_v60 }
  0xff   :  { %v244_v2 = vadd.f32 1.0, %v231_v62 }
 0x101   :  { %v448_v54 = vpop.eup %447 }
 0x102   :  { %v237_v56 = vadd.f32 1.0, %v448_v54 }
 0x104   :  { %449 = vrcp.f32 %v237_v56 }
 0x10e   :  { %v450_v63 = vpop.eup %449 }
 0x10f   :  { %v240_v0 = vmul.f32 %v450_v63, %v144_v41 }
 0x111   :  { %v242_v1 = vmul.f32 %v241_v61, %v240_v0 }
 0x113   :  { %v243_v3 = vadd.f32 %v242_v1, %v150_v59 }
 0x115   :  { %v245_v4 = vmul.f32 %v244_v2, %v243_v3 }
 0x117   :  { %v246_v5 = vadd.f32 %v245_v4, %v231_v62 }
 0x119   :  { %412 = vmatmul.mubr.msk.f32.vlgmr.msra.gmra.mrb[6].mxu0 %vm262_vm2, %v246_v5 }
 0x1ec   :  { %v332_v7 = vpop.f32.mrb[6].mxu0 }
 0x1ed   :  { %v333_v8 = vadd.f32 %v360_v6, %v332_v7  ;;  %v413_v9 = vpop.f32.mrb[7].mxu0 }
 0x1ef   :  { %337 = vst.msk [vmem:[#allocation5] sm:$0xff] %vm336_vm3, %v333_v8 }
 0x1f0   :  { %484 = shalt.err (!%p481_p12)
}
 0x1f1   :  { %s485_s8 = scalar_lea.hbm %s608_s5, 128 }
 0x1f2   :  { %p486_p13 = scmp.ne.s32.totalorder %s608_s5, %s485_s8  ;;  %p489_p0 = scmp.lt.u32.totalorder %s485_s8, %s608_s5 }
 0x1f4   :  { %p491_p1 = pnand %p489_p0, %p486_p13 }
 0x1f6   :  { %494 = shalt.err (!%p491_p1)
}
 0x1f7   :  { %347 = dma.vmem_to_hbm [thread:$0]  %s345_s30, 128, %s608_s5, [#allocation4]  }
 0x1f8   :  { %497 = dma.done.wait [#allocation4], 128  }
 0x1f9   :  { %498 = vsyncadd [#allocation4], 4294967168 }
 0x1fa   :  { %351 = vsyncpa [#allocation3], 1 }
 0x1fb   :  { %352 = vsyncpa [#allocation4], 1 }

</bundles_post_ra>
